<compile_context>
chip_gen: v7x
topology: tpu7x:2x2x1
jax: 0.10.0
libtpu: 0.0.40
codegen_flags: <defaults>
</compile_context>

<pallas_src>
import functools

import jax
import jax.numpy as jnp
from jax.experimental import pallas as pl
from jax.experimental.pallas import tpu as pltpu

EPS = 1e-5


def _residual_block_kernel(x_ref, w1_ref, w2_ref, gm_ref,
                           g1_ref, b1_ref, g2_ref, b2_ref, o_ref, *, H):
    # x_ref : (N*H, W*C)     input, lane-dense layout (rows=(n,y), lanes=(x,c)), f32
    # w*_ref: (3*W*C, W*C)   row-stacked banded per-ky weight slabs, bf16
    # gm_ref: (W*C, W*C)     channel-group matrix (1/W mean-over-x folded in), f32
    # g*/b* : (1, W*C)       BN gamma/beta tiled over x, f32
    # o_ref : (N*H, W*C)     f32
    NH, WC = x_ref.shape
    inv_rows = 1.0 / NH                              # static trace-time constant
    x = x_ref[...]

    # Row masks for the y-shifts (conv padding=1 in y). Built once from an
    # (NH, 1) iota and reused by both convs (lane-broadcast inside the select).
    y = jax.lax.broadcasted_iota(jnp.int32, (NH, 1), 0) % H
    mask_up = y > 0          # row y-1 exists inside the image
    mask_dn = y < H - 1      # row y+1 exists inside the image

    def conv3x3(a, wb_ref):
        # One K=3*WC MXU matmul per conv: the three ky taps (y-1, y, y+1) are
        # produced with an XLU sublane roll + mask and lane-concatenated, then
        # hit the row-stacked banded slab. bf16 LHS/RHS, f32 accumulation.
        a_up = jnp.where(mask_up, pltpu.roll(a, shift=1, axis=0), 0.0)       # a[y-1]
        a_dn = jnp.where(mask_dn, pltpu.roll(a, shift=NH - 1, axis=0), 0.0)  # a[y+1]
        lhs = jnp.concatenate([a_up, a, a_dn], axis=1).astype(jnp.bfloat16)  # (NH, 3*WC)
        return jnp.dot(lhs, wb_ref[...], preferred_element_type=jnp.float32)

    def bn_scale_shift(acc, g_ref, b_ref):
        # Training-mode batch stats from the f32 accumulator. sum and sum-of-
        # squares are stacked into a single (2, WC) LHS -> one tiny f32 matmul
        # against gm per BN. gm folds the 1/W mean over x; 1/NH applied here.
        col_sum = jnp.sum(acc, axis=0, keepdims=True)            # (1, WC)
        col_sumsq = jnp.sum(acc * acc, axis=0, keepdims=True)    # (1, WC)
        stats = jnp.concatenate([col_sum, col_sumsq], axis=0)    # (2, WC)
        red = jnp.dot(stats, gm_ref[...],
                      preferred_element_type=jnp.float32) * inv_rows
        mean = red[0:1, :]
        ex2 = red[1:2, :]
        var = jnp.maximum(ex2 - mean * mean, 0.0)                # cancellation guard
        s = g_ref[...] * jax.lax.rsqrt(var + EPS)
        t = b_ref[...] - mean * s
        return s, t

    # conv1 -> bn1 -> relu
    acc1 = conv3x3(x, w1_ref)
    s1, t1 = bn_scale_shift(acc1, g1_ref, b1_ref)
    h = jnp.maximum(acc1 * s1 + t1, 0.0)

    # conv2 -> bn2 -> +residual -> relu (residual = x, already in this layout)
    acc2 = conv3x3(h, w2_ref)
    s2, t2 = bn_scale_shift(acc2, g2_ref, b2_ref)
    o_ref[...] = jnp.maximum(acc2 * s2 + t2 + x, 0.0)


def _fused_banded_weights(w_oihw, W):
    """OIHW (Cout, Cin, 3, 3) -> (3*W*Cin, W*Cout) row-stacked banded slabs.

    Block ky of the stack satisfies
      slab[ky][(x_in*Cin + ci), (x_out*Cout + co)] =
          w[co, ci, ky, kx]  if x_in == x_out + (kx - 1) else 0
    (zero off-band blocks implement the x-direction zero padding).
    NOTE: band density is ~3/W nonzero; fine at the toy W*C=128 shape
    (latency-bound), see TODO at top for realistic channel counts.
    """
    Cout, Cin, KH, KW = w_oihw.shape
    w = w_oihw.astype(jnp.float32)
    slabs = []
    for ky in range(KH):
        m = jnp.zeros((W * Cin, W * Cout), jnp.float32)
        for kx in range(KW):
            blk = w[:, :, ky, kx].T                            # (Cin, Cout)
            band = jnp.eye(W, W, k=1 - kx, dtype=jnp.float32)  # x_in = x_out + kx - 1
            m = m + jnp.kron(band, blk)
        slabs.append(m)
    return jnp.concatenate(slabs, axis=0)                      # (3*W*Cin, W*Cout)


def prepare_residual_block_params(w1_oihw, w2_oihw, g1, b1, g2, b2, W):
    """Hoisted per-layer constants: build once, reuse on every forward call."""
    Cout, Cin = w1_oihw.shape[0], w1_oihw.shape[1]
    assert Cin == Cout, "downsample=None requires in_channels == out_channels"
    WC = W * Cout
    w1b = _fused_banded_weights(w1_oihw, W).astype(jnp.bfloat16)   # (3*WC, WC)
    w2b = _fused_banded_weights(w2_oihw, W).astype(jnp.bfloat16)   # (3*WC, WC)
    # (stats @ gm)[x*C + c] = mean over x of the per-lane stat of channel c,
    # broadcast back over every x slot; the remaining 1/(N*H) is in-kernel.
    lane = jnp.arange(WC)
    gm = (lane[:, None] % Cout == lane[None, :] % Cout).astype(jnp.float32) / W
    g1t = jnp.tile(g1.astype(jnp.float32), W).reshape(1, WC)
    b1t = jnp.tile(b1.astype(jnp.float32), W).reshape(1, WC)
    g2t = jnp.tile(g2.astype(jnp.float32), W).reshape(1, WC)
    b2t = jnp.tile(b2.astype(jnp.float32), W).reshape(1, WC)
    return w1b, w2b, gm, g1t, b1t, g2t, b2t


def residual_block_lane_dense(x2d, params, H):
    """Forward on activations already in the lane-dense (N*H, W*C) layout."""
    w1b, w2b, gm, g1t, b1t, g2t, b2t = params
    NH, WC = x2d.shape
    conv_flops = 2 * 2 * NH * (3 * WC) * WC          # 2 convs, one K=3*WC matmul each
    bytes_accessed = (4 * (x2d.size + gm.size + 4 * WC + NH * WC)
                      + 2 * (w1b.size + w2b.size))
    vmem = pl.BlockSpec(memory_space=pltpu.MemorySpace.VMEM)
    return pl.pallas_call(
        functools.partial(_residual_block_kernel, H=H),
        out_shape=jax.ShapeDtypeStruct((NH, WC), jnp.float32),
        in_specs=[vmem] * 8,
        out_specs=vmem,
        compiler_params=pltpu.CompilerParams(vmem_limit_bytes=32 * 1024 * 1024),
        cost_estimate=pl.CostEstimate(flops=conv_flops,
                                      transcendentals=2 * WC,
                                      bytes_accessed=bytes_accessed),
    )(x2d, w1b, w2b, gm, g1t, b1t, g2t, b2t)


@jax.jit
def residual_block(x_nchw, w1b, w2b, gm, g1t, b1t, g2t, b2t):
    """NCHW forward of ResidualBlock(in_c, out_c, stride=1, downsample=None).

    For stacks of blocks, prefer residual_block_lane_dense directly and keep
    activations in the (N*H, W*C) layout between blocks (skips the transposes).
    """
    N, C, H, W = x_nchw.shape
    x2d = jnp.transpose(x_nchw, (0, 2, 3, 1)).astype(jnp.float32).reshape(N * H, W * C)
    out2d = residual_block_lane_dense(x2d, (w1b, w2b, gm, g1t, b1t, g2t, b2t), H)
    return jnp.transpose(out2d.reshape(N, H, W, C), (0, 3, 1, 2))   # back to NCHW


def _reference(x_nchw, w1, w2, g1, b1, g2, b2):
    """Pure-JAX f32 reference (NCHW, matches PyTorch training-mode forward)."""
    def conv(x, w):
        return jax.lax.conv_general_dilated(
            x, w, window_strides=(1, 1), padding=((1, 1), (1, 1)),
            dimension_numbers=("NCHW", "OIHW", "NCHW"))

    def bn(x, g, b):
        mean = jnp.mean(x, axis=(0, 2, 3), keepdims=True)
        var = jnp.mean((x - mean) ** 2, axis=(0, 2, 3), keepdims=True)
        return (x - mean) * jax.lax.rsqrt(var + EPS) * g.reshape(1, -1, 1, 1) \
            + b.reshape(1, -1, 1, 1)

    out = jax.nn.relu(bn(conv(x_nchw, w1), g1, b1))
    out = bn(conv(out, w2), g2, b2)
    return jax.nn.relu(out + x_nchw)


if __name__ == "__main__":
    key = jax.random.PRNGKey(0)
    k1, k2, k3, k4, k5, k6, k7 = jax.random.split(key, 7)

    N, C, H, W = 2, 8, 16, 16                     # W*C = 128 -> full-lane layout
    x = jax.random.normal(k1, (N, C, H, W), jnp.float32)
    w1 = jax.random.normal(k2, (C, C, 3, 3), jnp.float32) * 0.1   # conv1.weight (OIHW)
    w2 = jax.random.normal(k3, (C, C, 3, 3), jnp.float32) * 0.1   # conv2.weight (OIHW)
    g1 = 1.0 + 0.1 * jax.random.normal(k4, (C,), jnp.float32)     # bn1.weight
    b1 = 0.1 * jax.random.normal(k5, (C,), jnp.float32)           # bn1.bias
    g2 = 1.0 + 0.1 * jax.random.normal(k6, (C,), jnp.float32)     # bn2.weight
    b2 = 0.1 * jax.random.normal(k7, (C,), jnp.float32)           # bn2.bias

    # Static per-layer prep (banded slabs, gm, tiled gamma/beta) hoisted out of
    # the forward call.
    params = prepare_residual_block_params(w1, w2, g1, b1, g2, b2, W)

    out = residual_block(x, *params)
    jax.block_until_ready(out)

    ref = _reference(x, w1, w2, g1, b1, g2, b2)
    assert out.shape == (N, C, H, W)
    err = float(jnp.max(jnp.abs(out - ref)))
    # bf16 MXU inputs (f32 accumulation + f32 BN stats) -> loosened tolerance
    # vs. the all-f32 version.
    assert jnp.allclose(out, ref, rtol=5e-2, atol=5e-2), f"max err {err}"
    print("KERNEL_OK")
</pallas_src>

<mosaic_0001>
module attributes {stable_mosaic.version = 11 : i64} {
  func.func @_residual_block_kernel(%arg0: memref<32x128xf32, #tpu.memory_space<vmem>>, %arg1: memref<384x128xbf16, #tpu.memory_space<vmem>>, %arg2: memref<384x128xbf16, #tpu.memory_space<vmem>>, %arg3: memref<128x128xf32, #tpu.memory_space<vmem>>, %arg4: memref<1x128xf32, #tpu.memory_space<vmem>>, %arg5: memref<1x128xf32, #tpu.memory_space<vmem>>, %arg6: memref<1x128xf32, #tpu.memory_space<vmem>>, %arg7: memref<1x128xf32, #tpu.memory_space<vmem>>, %arg8: memref<32x128xf32, #tpu.memory_space<vmem>>) attributes {dimension_semantics = [], scalar_prefetch = 0 : i64, scratch_operands = 0 : i64, tpu.core_type = #tpu.core_type<tc>} {
    %c0 = arith.constant 0 : index
    %c0_0 = arith.constant 0 : index
    %0 = vector.load %arg0[%c0, %c0_0] : memref<32x128xf32, #tpu.memory_space<vmem>>, vector<32x128xf32>
    %1 = tpu.iota {dimensions = array<i32: 0>} : vector<32x1xi32>
    %c16_i32 = arith.constant 16 : i32
    %c0_i32 = arith.constant 0 : i32
    %2 = arith.cmpi eq, %c16_i32, %c0_i32 : i32
    %c1_i32 = arith.constant 1 : i32
    %3 = arith.select %2, %c1_i32, %c16_i32 : i32
    %4 = vector.broadcast %3 : i32 to vector<32x1xi32>
    %5 = arith.remsi %1, %4 : vector<32x1xi32>
    %c0_i32_1 = arith.constant 0 : i32
    %6 = vector.broadcast %c0_i32_1 : i32 to vector<32x1xi32>
    %7 = arith.cmpi ne, %5, %6 : vector<32x1xi32>
    %c0_i32_2 = arith.constant 0 : i32
    %8 = vector.broadcast %c0_i32_2 : i32 to vector<32x1xi32>
    %9 = arith.cmpi slt, %5, %8 : vector<32x1xi32>
    %c0_i32_3 = arith.constant 0 : i32
    %10 = arith.cmpi slt, %3, %c0_i32_3 : i32
    %11 = vector.broadcast %10 : i1 to vector<32x1xi1>
    %12 = vector.broadcast %11 : vector<32x1xi1> to vector<32x1xi1>
    %13 = arith.xori %9, %12 : vector<32x1xi1>
    %14 = arith.andi %13, %7 : vector<32x1xi1>
    %15 = vector.broadcast %3 : i32 to vector<32x1xi32>
    %16 = arith.addi %5, %15 : vector<32x1xi32>
    %17 = arith.select %14, %16, %5 : vector<32x1xi1>, vector<32x1xi32>
    %c0_i32_4 = arith.constant 0 : i32
    %18 = vector.broadcast %c0_i32_4 : i32 to vector<32x1xi32>
    %19 = arith.cmpi sgt, %17, %18 : vector<32x1xi32>
    %c15_i32 = arith.constant 15 : i32
    %20 = vector.broadcast %c15_i32 : i32 to vector<32x1xi32>
    %21 = arith.cmpi slt, %17, %20 : vector<32x1xi32>
    %c1_i32_5 = arith.constant 1 : i32
    %22 = tpu.dynamic_rotate %0 by %c1_i32_5 dim 0 : vector<32x128xf32>, i32 -> vector<32x128xf32>
    %cst = arith.constant 0.000000e+00 : f32
    %23 = vector.shape_cast %19 : vector<32x1xi1> to vector<32x1xi1>
    %24 = vector.broadcast %23 : vector<32x1xi1> to vector<32x128xi1>
    %25 = vector.broadcast %cst : f32 to vector<32x128xf32>
    %26 = arith.select %24, %22, %25 : vector<32x128xi1>, vector<32x128xf32>
    %c31_i32 = arith.constant 31 : i32
    %27 = tpu.dynamic_rotate %0 by %c31_i32 dim 0 : vector<32x128xf32>, i32 -> vector<32x128xf32>
    %cst_6 = arith.constant 0.000000e+00 : f32
    %28 = vector.shape_cast %21 : vector<32x1xi1> to vector<32x1xi1>
    %29 = vector.broadcast %28 : vector<32x1xi1> to vector<32x128xi1>
    %30 = vector.broadcast %cst_6 : f32 to vector<32x128xf32>
    %31 = arith.select %29, %27, %30 : vector<32x128xi1>, vector<32x128xf32>
    %32 = tpu.concatenate %26, %0, %31 in 1 : vector<32x128xf32>, vector<32x128xf32>, vector<32x128xf32> -> vector<32x384xf32>
    %33 = arith.truncf %32 : vector<32x384xf32> to vector<32x384xbf16>
    %c0_7 = arith.constant 0 : index
    %c0_8 = arith.constant 0 : index
    %34 = vector.load %arg1[%c0_7, %c0_8] : memref<384x128xbf16, #tpu.memory_space<vmem>>, vector<384x128xbf16>
    %cst_9 = arith.constant dense<0.000000e+00> : vector<32x128xf32>
    %35 = tpu.matmul %33, %34, %cst_9 {dimension_numbers = #tpu.dot_dimension_numbers<[1], [0], [0], [1], [0, 0, 1, 1], [], []>} : vector<32x384xbf16>, vector<384x128xbf16>, vector<32x128xf32> -> vector<32x128xf32>
    %cst_10 = arith.constant dense<0.000000e+00> : vector<128xf32>
    %36 = vector.multi_reduction <add>, %35, %cst_10 [0] : vector<32x128xf32> to vector<128xf32>
    %37 = vector.shape_cast %36 : vector<128xf32> to vector<1x128xf32>
    %38 = arith.mulf %35, %35 : vector<32x128xf32>
    %cst_11 = arith.constant dense<0.000000e+00> : vector<128xf32>
    %39 = vector.multi_reduction <add>, %38, %cst_11 [0] : vector<32x128xf32> to vector<128xf32>
    %40 = vector.shape_cast %39 : vector<128xf32> to vector<1x128xf32>
    %41 = tpu.concatenate %37, %40 in 0 : vector<1x128xf32>, vector<1x128xf32> -> vector<2x128xf32>
    %c0_12 = arith.constant 0 : index
    %c0_13 = arith.constant 0 : index
    %42 = vector.load %arg3[%c0_12, %c0_13] : memref<128x128xf32, #tpu.memory_space<vmem>>, vector<128x128xf32>
    %cst_14 = arith.constant dense<0.000000e+00> : vector<2x128xf32>
    %43 = tpu.matmul %41, %42, %cst_14 {dimension_numbers = #tpu.dot_dimension_numbers<[1], [0], [0], [1], [0, 0, 1, 1], [], []>} : vector<2x128xf32>, vector<128x128xf32>, vector<2x128xf32> -> vector<2x128xf32>
    %cst_15 = arith.constant 3.125000e-02 : f32
    %44 = vector.broadcast %cst_15 : f32 to vector<2x128xf32>
    %45 = arith.mulf %43, %44 : vector<2x128xf32>
    %46 = vector.extract_strided_slice %45 {offsets = [0, 0], sizes = [1, 128], strides = [1, 1]} : vector<2x128xf32> to vector<1x128xf32>
    %47 = vector.extract_strided_slice %45 {offsets = [1, 0], sizes = [1, 128], strides = [1, 1]} : vector<2x128xf32> to vector<1x128xf32>
    %48 = arith.mulf %46, %46 : vector<1x128xf32>
    %49 = arith.subf %47, %48 : vector<1x128xf32>
    %cst_16 = arith.constant 0.000000e+00 : f32
    %50 = vector.broadcast %cst_16 : f32 to vector<1x128xf32>
    %51 = arith.maximumf %49, %50 : vector<1x128xf32>
    %c0_17 = arith.constant 0 : index
    %c0_18 = arith.constant 0 : index
    %52 = vector.load %arg4[%c0_17, %c0_18] : memref<1x128xf32, #tpu.memory_space<vmem>>, vector<1x128xf32>
    %cst_19 = arith.constant 9.99999974E-6 : f32
    %53 = vector.broadcast %cst_19 : f32 to vector<1x128xf32>
    %54 = arith.addf %51, %53 : vector<1x128xf32>
    %55 = math.rsqrt %54 : vector<1x128xf32>
    %56 = arith.mulf %52, %55 : vector<1x128xf32>
    %c0_20 = arith.constant 0 : index
    %c0_21 = arith.constant 0 : index
    %57 = vector.load %arg5[%c0_20, %c0_21] : memref<1x128xf32, #tpu.memory_space<vmem>>, vector<1x128xf32>
    %58 = arith.mulf %46, %56 : vector<1x128xf32>
    %59 = arith.subf %57, %58 : vector<1x128xf32>
    %60 = vector.broadcast %56 : vector<1x128xf32> to vector<32x128xf32>
    %61 = arith.mulf %35, %60 : vector<32x128xf32>
    %62 = vector.broadcast %59 : vector<1x128xf32> to vector<32x128xf32>
    %63 = arith.addf %61, %62 : vector<32x128xf32>
    %cst_22 = arith.constant 0.000000e+00 : f32
    %64 = vector.broadcast %cst_22 : f32 to vector<32x128xf32>
    %65 = arith.maximumf %63, %64 : vector<32x128xf32>
    %c1_i32_23 = arith.constant 1 : i32
    %66 = tpu.dynamic_rotate %65 by %c1_i32_23 dim 0 : vector<32x128xf32>, i32 -> vector<32x128xf32>
    %cst_24 = arith.constant 0.000000e+00 : f32
    %67 = vector.shape_cast %19 : vector<32x1xi1> to vector<32x1xi1>
    %68 = vector.broadcast %67 : vector<32x1xi1> to vector<32x128xi1>
    %69 = vector.broadcast %cst_24 : f32 to vector<32x128xf32>
    %70 = arith.select %68, %66, %69 : vector<32x128xi1>, vector<32x128xf32>
    %c31_i32_25 = arith.constant 31 : i32
    %71 = tpu.dynamic_rotate %65 by %c31_i32_25 dim 0 : vector<32x128xf32>, i32 -> vector<32x128xf32>
    %cst_26 = arith.constant 0.000000e+00 : f32
    %72 = vector.shape_cast %21 : vector<32x1xi1> to vector<32x1xi1>
    %73 = vector.broadcast %72 : vector<32x1xi1> to vector<32x128xi1>
    %74 = vector.broadcast %cst_26 : f32 to vector<32x128xf32>
    %75 = arith.select %73, %71, %74 : vector<32x128xi1>, vector<32x128xf32>
    %76 = tpu.concatenate %70, %65, %75 in 1 : vector<32x128xf32>, vector<32x128xf32>, vector<32x128xf32> -> vector<32x384xf32>
    %77 = arith.truncf %76 : vector<32x384xf32> to vector<32x384xbf16>
    %c0_27 = arith.constant 0 : index
    %c0_28 = arith.constant 0 : index
    %78 = vector.load %arg2[%c0_27, %c0_28] : memref<384x128xbf16, #tpu.memory_space<vmem>>, vector<384x128xbf16>
    %cst_29 = arith.constant dense<0.000000e+00> : vector<32x128xf32>
    %79 = tpu.matmul %77, %78, %cst_29 {dimension_numbers = #tpu.dot_dimension_numbers<[1], [0], [0], [1], [0, 0, 1, 1], [], []>} : vector<32x384xbf16>, vector<384x128xbf16>, vector<32x128xf32> -> vector<32x128xf32>
    %cst_30 = arith.constant dense<0.000000e+00> : vector<128xf32>
    %80 = vector.multi_reduction <add>, %79, %cst_30 [0] : vector<32x128xf32> to vector<128xf32>
    %81 = vector.shape_cast %80 : vector<128xf32> to vector<1x128xf32>
    %82 = arith.mulf %79, %79 : vector<32x128xf32>
    %cst_31 = arith.constant dense<0.000000e+00> : vector<128xf32>
    %83 = vector.multi_reduction <add>, %82, %cst_31 [0] : vector<32x128xf32> to vector<128xf32>
    %84 = vector.shape_cast %83 : vector<128xf32> to vector<1x128xf32>
    %85 = tpu.concatenate %81, %84 in 0 : vector<1x128xf32>, vector<1x128xf32> -> vector<2x128xf32>
    %c0_32 = arith.constant 0 : index
    %c0_33 = arith.constant 0 : index
    %86 = vector.load %arg3[%c0_32, %c0_33] : memref<128x128xf32, #tpu.memory_space<vmem>>, vector<128x128xf32>
    %cst_34 = arith.constant dense<0.000000e+00> : vector<2x128xf32>
    %87 = tpu.matmul %85, %86, %cst_34 {dimension_numbers = #tpu.dot_dimension_numbers<[1], [0], [0], [1], [0, 0, 1, 1], [], []>} : vector<2x128xf32>, vector<128x128xf32>, vector<2x128xf32> -> vector<2x128xf32>
    %cst_35 = arith.constant 3.125000e-02 : f32
    %88 = vector.broadcast %cst_35 : f32 to vector<2x128xf32>
    %89 = arith.mulf %87, %88 : vector<2x128xf32>
    %90 = vector.extract_strided_slice %89 {offsets = [0, 0], sizes = [1, 128], strides = [1, 1]} : vector<2x128xf32> to vector<1x128xf32>
    %91 = vector.extract_strided_slice %89 {offsets = [1, 0], sizes = [1, 128], strides = [1, 1]} : vector<2x128xf32> to vector<1x128xf32>
    %92 = arith.mulf %90, %90 : vector<1x128xf32>
    %93 = arith.subf %91, %92 : vector<1x128xf32>
    %cst_36 = arith.constant 0.000000e+00 : f32
    %94 = vector.broadcast %cst_36 : f32 to vector<1x128xf32>
    %95 = arith.maximumf %93, %94 : vector<1x128xf32>
    %c0_37 = arith.constant 0 : index
    %c0_38 = arith.constant 0 : index
    %96 = vector.load %arg6[%c0_37, %c0_38] : memref<1x128xf32, #tpu.memory_space<vmem>>, vector<1x128xf32>
    %cst_39 = arith.constant 9.99999974E-6 : f32
    %97 = vector.broadcast %cst_39 : f32 to vector<1x128xf32>
    %98 = arith.addf %95, %97 : vector<1x128xf32>
    %99 = math.rsqrt %98 : vector<1x128xf32>
    %100 = arith.mulf %96, %99 : vector<1x128xf32>
    %c0_40 = arith.constant 0 : index
    %c0_41 = arith.constant 0 : index
    %101 = vector.load %arg7[%c0_40, %c0_41] : memref<1x128xf32, #tpu.memory_space<vmem>>, vector<1x128xf32>
    %102 = arith.mulf %90, %100 : vector<1x128xf32>
    %103 = arith.subf %101, %102 : vector<1x128xf32>
    %104 = vector.broadcast %100 : vector<1x128xf32> to vector<32x128xf32>
    %105 = arith.mulf %79, %104 : vector<32x128xf32>
    %106 = vector.broadcast %103 : vector<1x128xf32> to vector<32x128xf32>
    %107 = arith.addf %105, %106 : vector<32x128xf32>
    %108 = arith.addf %107, %0 : vector<32x128xf32>
    %cst_42 = arith.constant 0.000000e+00 : f32
    %109 = vector.broadcast %cst_42 : f32 to vector<32x128xf32>
    %110 = arith.maximumf %108, %109 : vector<32x128xf32>
    %c0_43 = arith.constant 0 : index
    %c0_44 = arith.constant 0 : index
    %111 = vector.load %arg8[%c0_43, %c0_44] : memref<32x128xf32, #tpu.memory_space<vmem>>, vector<32x128xf32>
    tpu.vector_store %arg8[%c0_43, %c0_44], %110 {strides = array<i32>} : memref<32x128xf32, #tpu.memory_space<vmem>>, vector<32x128xf32>,
    return
  }
}

</mosaic_0001>

<bundles_post_ra>
// kernel: residual_block.1
= control target key start
LH: loop header
LB: loop body
LE: loop exit
PB: predicated region body
PF: predicated region fallthrough
CT: control target
= control target key end

     0   :  { %v34_v8 = vlaneseq  ;;  %vm1475_vm4 = vmmov 1   ;;  %vm1477_vm11 = vmmov 0   ;;  %vm455_vm12 = vcmask 1040384   ;;  %s1951_s1 = inlined_call_operand.vmem [shape: bf16[384,128], index: 1, kind: input, shape index: {}]   ;;  %s1952_s0 = inlined_call_operand.vmem [shape: f32[32,128], index: 0, kind: input, shape index: {}]   ;;  %s1953_s3 = inlined_call_operand.vmem [shape: f32[128,128], index: 3, kind: input, shape index: {}]   ;;  %s1954_s2 = inlined_call_operand.vmem [shape: bf16[384,128], index: 2, kind: input, shape index: {}]   ;;  %s1955_s4 = inlined_call_operand.vmem [shape: f32[1,128], index: 4, kind: input, shape index: {}]   ;;  %s1956_s5 = inlined_call_operand.vmem [shape: f32[1,128], index: 5, kind: input, shape index: {}]   ;;  %s1957_s6 = inlined_call_operand.vmem [shape: f32[1,128], index: 6, kind: input, shape index: {}]   ;;  %s1958_s7 = inlined_call_operand.vmem [shape: f32[1,128], index: 7, kind: input, shape index: {}]   ;;  %s1959_s8 = inlined_call_operand.vmem [shape: f32[32,128], index: 8, kind: output, shape index: {}]  }
   0x1   :  { %v1423_v0 = vld [vmem:[%s1951_s1 + $0x40] sm:$0xff]   ;;  %v1426_v3 = vld [vmem:[%s1951_s1 + $0x48] sm:$0xff]   ;;  %v1429_v6 = vld [vmem:[%s1951_s1 + $0x50] sm:$0xff]  }
   0x2   :  { %v1424_v1 = vld [vmem:[%s1951_s1] sm:$0xff]   ;;  %1150 = vmatprep.subr.bf16.mxu0 %v1423_v0  ;;  %v1427_v4 = vld [vmem:[%s1951_s1 + $0x8] sm:$0xff]   ;;  %v1430_v7 = vld [vmem:[%s1951_s1 + $0x10] sm:$0xff]   ;;  %v1561_v13 = vshrl.u32 %v34_v8, 7 }
   0x3   :  { %v1425_v2 = vld [vmem:[%s1951_s1 + $0x80] sm:$0xff]   ;;  %1151 = vmatpush3.bf16.msra.mxu0 %v1424_v1  ;;  %v1428_v5 = vld [vmem:[%s1951_s1 + $0x88] sm:$0xff]   ;;  %v1431_v9 = vld [vmem:[%s1951_s1 + $0x90] sm:$0xff]  }
   0x4   :  { %1260 = vmatprep.subr.bf16.mxu1 %v1425_v2  ;;  %1152 = vmatprep.subr.bf16.mxu0 %v1426_v3  ;;  %v1432_v10 = vld [vmem:[%s1951_s1 + $0x58] sm:$0xff]   ;;  %v1435_v14 = vld [vmem:[%s1951_s1 + $0x60] sm:$0xff]   ;;  %v36_v17 = vadd.s32 8, %v1561_v13  ;;  %v1438_v18 = vld [vmem:[%s1951_s1 + $0x68] sm:$0xff]   ;;  %v38_v23 = vadd.s32 24, %v1561_v13  ;;  %v43_v26 = vand.u32 15, %v1561_v13 }
   0x5   :  { %1261 = vmatpush3.bf16.msra.mxu1 %v1425_v2  ;;  %v1433_v11 = vld [vmem:[%s1951_s1 + $0x18] sm:$0xff]   ;;  %v1437_v15 = vld [vmem:[%s1951_s1 + $0xa0] sm:$0xff]   ;;  %v1440_v19 = vld [vmem:[%s1951_s1 + $0xa8] sm:$0xff]   ;;  %vm99_vm0 = vcmp.lt.s32.totalorder %v1561_v13, 1  ;;  %vm120_vm2 = vcmp.lt.s32.totalorder %v1561_v13, 7  ;;  %v37_v49 = vadd.s32 16, %v1561_v13 }
   0x6   :  { %1262 = vmatprep.subr.bf16.mxu1 %v1428_v5  ;;  %v1434_v12 = vld [vmem:[%s1951_s1 + $0x98] sm:$0xff]   ;;  %v1436_v16 = vld [vmem:[%s1951_s1 + $0x20] sm:$0xff]   ;;  %v1439_v20 = vld [vmem:[%s1951_s1 + $0x28] sm:$0xff]   ;;  %v50_v21 = vand.u32 15, %v36_v17  ;;  %v64_v32 = vand.u32 15, %v38_v23  ;;  %vm87_vm3 = vcmp.gt.s32.totalorder %v43_v26, 0 }
   0x7   :  { %1153 = vmatpush3.bf16.msra.mxu0 %v1427_v4  ;;  %v1441_v22 = vld [vmem:[%s1951_s1 + $0x70] sm:$0xff]   ;;  %v1444_v27 = vld [vmem:[%s1951_s1 + $0x78] sm:$0xff]   ;;  %v1600_v28 = vld [vmem:[%s1952_s0] sm:$0xff]  ;;  %v57_v58 = vand.u32 15, %v37_v49  ;;  %v1476_v3 = vmov 0.0|0.0  }
   0x8   :  { %1154 = vmatprep.subr.bf16.mxu0 %v1429_v6  ;;  %v1442_v24 = vld [vmem:[%s1951_s1 + $0x30] sm:$0xff]   ;;  %v1605_v29 = vld [vmem:[%s1952_s0 + $0x8] sm:$0xff]  ;;  %v1610_v30 = vld [vmem:[%s1952_s0 + $0x18] sm:$0xff]  ;;  %vm1612_vm1 = vcmp.lt.s32.totalorder %v50_v21, 15  ;;  %v95_v33 = vrot.slane %v1600_v28, 7  ;;  %v116_v39 = vrot.slane %v1600_v28, 1 }
   0x9   :  { %1263 = vmatpush3.bf16.msra.mxu1 %v1428_v5  ;;  %v1443_v25 = vld [vmem:[%s1951_s1 + $0xb0] sm:$0xff]   ;;  %v96_v34 = vrot.slane %v1605_v29, 7  ;;  %v138_v35 = vpack.c.bf16 %v1605_v29, %v1600_v28  ;;  %v98_v36 = vrot.slane %v1610_v30, 7  ;;  %v1446_v38 = vld [vmem:[%s1951_s1 + $0xb8] sm:$0xff]   ;;  %v117_v40 = vrot.slane %v1605_v29, 1  ;;  %vm1648_vm5 = vmpackc.low %vm1612_vm1, %vm1475_vm4 }
   0xa   :  { %1264 = vmatprep.subr.bf16.mxu1 %v1431_v9  ;;  %v1625_v37 = vld [vmem:[%s1952_s0 + $0x10] sm:$0xff]  ;;  %v119_v42 = vrot.slane %v1610_v30, 1  ;;  %v1445_v43 = vld [vmem:[%s1951_s1 + $0x38] sm:$0xff]   ;;  %vm94_vm6 = vcmp.lt.s32.totalorder %v64_v32, 15  ;;  %vm1658_vm7 = vmpackc.low %vm1475_vm4, %vm87_vm3  ;;  %vm89_vm9 = vcmp.gt.s32.totalorder %v57_v58, 0 }
   0xb   :  { %1155 = vmatpush3.bf16.msra.mxu0 %v1430_v7  ;;  %v118_v41 = vrot.slane %v1625_v37, 1  ;;  %367 = vmatprep.mubr.bf16.mxu0 %v138_v35  ;;  %v102_v44 = vsel %vm99_vm0, %v95_v33, %v96_v34  ;;  %v103_v45 = vsel %vm99_vm0, %v98_v36, %v95_v33  ;;  %v123_v47 = vsel %vm120_vm2, %v116_v39, %v117_v40  ;;  %vm1668_vm8 = vmpackc.low %vm94_vm6, %vm1475_vm4  ;;  %v457_v0 = vld [vmem:[%s1953_s3] sm:$0xff]  ;;  %v458_v1 = vld [vmem:[%s1953_s3 + $0x8] sm:$0xff] }
   0xc   :  { %1156 = vmatprep.subr.bf16.mxu0 %v1432_v10  ;;  %v124_v52 = vsel %vm120_vm2, %v119_v42, %v116_v39  ;;  %v1103_v53 = vpack.c.bf16 %v102_v44, %v103_v45  ;;  %v141_v55 = vpack.c.bf16 %v1610_v30, %v1625_v37  ;;  %v97_v56 = vrot.slane %v1625_v37, 7  ;;  %vm1681_vm10 = vmpackc.low %vm1475_vm4, %vm89_vm9  ;;  %v459_v4 = vld [vmem:[%s1953_s3 + $0x10] sm:$0xff]  ;;  %v460_v5 = vld [vmem:[%s1953_s3 + $0x18] sm:$0xff] }
   0xd   :  { %1265 = vmatpush3.bf16.msra.mxu1 %v1431_v9  ;;  %v122_v46 = vsel %vm120_vm2, %v117_v40, %v118_v41  ;;  %v121_v51 = vsel %vm120_vm2, %v118_v41, %v119_v42  ;;  %v1693_v2 = vpack.c.bf16 %v458_v1, %v457_v0  ;;  %v1704_v6 = vpack.c.bf16 %v460_v5, %v459_v4  ;;  %v461_v7 = vld [vmem:[%s1953_s3 + $0x20] sm:$0xff]  ;;  %v462_v8 = vld [vmem:[%s1953_s3 + $0x28] sm:$0xff]  ;;  %v463_v10 = vld [vmem:[%s1953_s3 + $0x30] sm:$0xff] }
   0xe   :  { %1266 = vmatprep.subr.bf16.mxu1 %v1434_v12  ;;  %v1109_v50 = vpack.c.bf16 %v122_v46, %v123_v47  ;;  %v1112_v57 = vpack.c.bf16 %v124_v52, %v121_v51  ;;  %v100_v60 = vsel %vm99_vm0, %v97_v56, %v98_v36  ;;  %v101_v61 = vsel %vm99_vm0, %v96_v34, %v97_v56  ;;  %v467_v17 = vld [vmem:[%s1953_s3 + $0x50] sm:$0xff]  ;;  %v470_v21 = vld [vmem:[%s1953_s3 + $0x68] sm:$0xff] }
   0xf   :  { %1157 = vmatpush3.bf16.msra.mxu0 %v1433_v11  ;;  %v1106_v62 = vpack.c.bf16 %v100_v60, %v101_v61  ;;  %v1714_v9 = vpack.c.bf16 %v462_v8, %v461_v7  ;;  %v464_v11 = vld [vmem:[%s1953_s3 + $0x38] sm:$0xff]  ;;  %v471_v23 = vld [vmem:[%s1953_s3 + $0x70] sm:$0xff] }
  0x10   :  { %1158 = vmatprep.subr.bf16.mxu0 %v1435_v14  ;;  %1276 = vmatprep.mubr.msk.bf16.mxu1 %vm1648_vm5, %v1109_v50  ;;  %v465_v14 = vld [vmem:[%s1953_s3 + $0x40] sm:$0xff] }
  0x11   :  { %1267 = vmatpush3.bf16.msra.mxu1 %v1434_v12  ;;  %v1724_v12 = vpack.c.bf16 %v464_v11, %v463_v10 }
  0x12   :  { %1268 = vmatprep.subr.bf16.mxu1 %v1437_v15 }
  0x13   :  { %1159 = vmatpush3.bf16.msra.mxu0 %v1436_v16 }
  0x14   :  { %1160 = vmatprep.subr.bf16.mxu0 %v1438_v18  ;;  %v468_v18 = vld [vmem:[%s1953_s3 + $0x58] sm:$0xff] }
  0x15   :  { %1269 = vmatpush3.bf16.msra.mxu1 %v1437_v15  ;;  %v466_v15 = vld [vmem:[%s1953_s3 + $0x48] sm:$0xff] }
  0x16   :  { %1270 = vmatprep.subr.bf16.mxu1 %v1440_v19  ;;  %v1734_v16 = vpack.c.bf16 %v466_v15, %v465_v14 }
  0x17   :  { %1161 = vmatpush3.bf16.msra.mxu0 %v1439_v20  ;;  %v469_v20 = vld [vmem:[%s1953_s3 + $0x60] sm:$0xff] }
  0x18   :  { %1162 = vmatprep.subr.bf16.mxu0 %v1441_v22  ;;  %v1754_v22 = vpack.c.bf16 %v470_v21, %v469_v20 }
  0x19   :  { %1271 = vmatpush3.bf16.msra.mxu1 %v1440_v19  ;;  %v1744_v19 = vpack.c.bf16 %v468_v18, %v467_v17 }
  0x1a   :  { %1272 = vmatprep.subr.bf16.mxu1 %v1443_v25 }
  0x1b   :  { %1163 = vmatpush3.bf16.msra.mxu0 %v1442_v24  ;;  %v472_v24 = vld [vmem:[%s1953_s3 + $0x78] sm:$0xff] }
  0x1c   :  { %1164 = vmatprep.subr.bf16.mxu0 %v1444_v27  ;;  %v1765_v26 = vpack.c.bf16 %v472_v24, %v471_v23  ;;  %v1447_v23 = vld [vmem:[%s1954_s2 + $0x40] sm:$0xff]  }
  0x1d   :  { %1273 = vmatpush3.bf16.msra.mxu1 %v1443_v25  ;;  %v1478_v25 = vmov 0.0   ;;  %v1448_v24 = vld [vmem:[%s1954_s2] sm:$0xff]  }
  0x1e   :  { %1274 = vmatprep.subr.bf16.mxu1 %v1446_v38 }
  0x1f   :  { %1165 = vmatpush3.bf16.msra.mxu0 %v1445_v43 }
  0x20   :  { %1370 = vmatprep.subr.bf16.mxu0 %v1476_v3 }
  0x21   :  { %1275 = vmatpush3.bf16.msra.mxu1 %v1446_v38 }
  0x22   :  { %1104 = vmatmul.mubr.msk.bf16.vlgmr.msra.gmra.mrb[0].mxu0 %vm1658_vm7, %v1103_v53  ;;  %1205 = vmatprep.subr.bf16.mxu1 %v1447_v23  ;;  %v1872_v23 = vsub.s32 0, %v1561_v13 }
  0x23   :  { %375 = vmatprep.mubr.bf16.mxu0 %v141_v55  ;;  %1372 = vmatpush3.bf16.msra.mxu0 %v1693_v2 }
  0x24   :  { %1277 = vmatmul.mubr.msk.bf16.vlgmr.msra.gmra.mrb[0].mxu1 %vm1668_vm8, %v1112_v57  ;;  %1373 = vmatprep.subr.bf16.mxu0 %v1476_v3 }
  0x25   :  { %1206 = vmatpush3.bf16.msra.mxu1 %v1448_v24 }
  0x27   :  { %1375 = vmatpush3.bf16.msra.mxu0 %v1704_v6 }
  0x28   :  { %1376 = vmatprep.subr.bf16.mxu0 %v1476_v3 }
  0x2a   :  { %1107 = vmatmul.mubr.msk.bf16.gmra.mrb[4].mxu0 %vm1681_vm10, %v1106_v62 }
  0x2b   :  { %1378 = vmatpush3.bf16.msra.mxu0 %v1714_v9  ;;  %1312 = vmatprep.mubr.msk.f32.mxu0 %vm1477_vm11, %v1478_v25 }
  0x2c   :  { %1379 = vmatprep.subr.bf16.mxu0 %v1476_v3 }
  0x2f   :  { %1381 = vmatpush3.bf16.msra.mxu0 %v1724_v12 }
  0x30   :  { %1382 = vmatprep.subr.bf16.mxu0 %v1476_v3 }
  0x33   :  { %1384 = vmatpush3.bf16.msra.mxu0 %v1734_v16 }
  0x34   :  { %1385 = vmatprep.subr.bf16.mxu0 %v1476_v3 }
  0x37   :  { %1387 = vmatpush3.bf16.msra.mxu0 %v1744_v19 }
  0x38   :  { %1388 = vmatprep.subr.bf16.mxu0 %v1476_v3 }
  0x3b   :  { %1390 = vmatpush3.bf16.msra.mxu0 %v1754_v22 }
  0x3c   :  { %1391 = vmatprep.subr.bf16.mxu0 %v1476_v3 }
  0x3f   :  { %1393 = vmatpush3.bf16.msra.mxu0 %v1765_v26 }
  0xf5   :  { %v1166_v27 = vpop.f32.mrb[0].mxu0 }
  0xf6   :  { %v1167_v31 = vpop.f32.mrb[1].mxu0 }
  0xf7   :  { %v1168_v32 = vadd.f32 %v1167_v31, %v1166_v27  ;;  %v1169_v33 = vpop.f32.mrb[2].mxu0  ;;  %v1278_v34 = vpop.f32.mrb[0].mxu1  ;;  %v1449_v27 = vld [vmem:[%s1954_s2 + $0x80] sm:$0xff]   ;;  %v1450_v31 = vld [vmem:[%s1954_s2 + $0x48] sm:$0xff]  }
  0xf8   :  { %v1170_v35 = vpop.f32.mrb[3].mxu0  ;;  %v418_v36 = vpop.f32.mrb[1].mxu1  ;;  %1315 = vmatprep.subr.bf16.mxu0 %v1449_v27  ;;  %1207 = vmatprep.subr.bf16.mxu1 %v1450_v31 }
  0xf9   :  { %v1171_v38 = vadd.f32 %v1170_v35, %v1169_v33  ;;  %v1769_v39 = vadd.f32 %v1168_v32, %v418_v36  ;;  %v1279_v40 = vpop.f32.mrb[2].mxu1  ;;  %v1451_v32 = vld [vmem:[%s1954_s2 + $0x8] sm:$0xff]   ;;  %v1454_v35 = vld [vmem:[%s1954_s2 + $0x10] sm:$0xff]  }
  0xfa   :  { %v421_v41 = vpop.f32.mrb[3].mxu1  ;;  %v1452_v33 = vld [vmem:[%s1954_s2 + $0x88] sm:$0xff]   ;;  %1208 = vmatpush3.bf16.msra.mxu1 %v1451_v32  ;;  %v1455_v36 = vld [vmem:[%s1954_s2 + $0x90] sm:$0xff]  }
  0xfb   :  { %v1771_v42 = vadd.f32 %v1171_v38, %v421_v41  ;;  %v442_v50 = vmul.f32 %v1769_v39, %v1769_v39  ;;  %v1456_v38 = vld [vmem:[%s1954_s2 + $0x58] sm:$0xff]  }
  0xfc   :  { %v1458_v41 = vld [vmem:[%s1954_s2 + $0x98] sm:$0xff]  }
  0xfd   :  { %v1172_v43 = vpop.f32.mrb[4].mxu0  ;;  %v443_v45 = vmul.f32 %v1771_v42, %v1771_v42  ;;  %v433_v51 = vadd.f32 %v1771_v42, %v1769_v39 }
  0xfe   :  { %v1173_v44 = vpop.f32.mrb[5].mxu0 }
  0xff   :  { %v1174_v46 = vadd.f32 %v1173_v44, %v1172_v43  ;;  %v1175_v47 = vpop.f32.mrb[6].mxu0  ;;  %v446_v55 = vadd.f32 %v443_v45, %v442_v50  ;;  %v1459_v43 = vld [vmem:[%s1954_s2 + $0x60] sm:$0xff]   ;;  %v1465_v50 = vld [vmem:[%s1954_s2 + $0x70] sm:$0xff]  }
 0x100   :  { %v1176_v49 = vpop.f32.mrb[7].mxu0  ;;  %v1460_v44 = vld [vmem:[%s1954_s2 + $0x20] sm:$0xff]  }
 0x101   :  { %v1779_v52 = vadd.f32 %v1278_v34, %v1174_v46  ;;  %v1177_v53 = vadd.f32 %v1176_v49, %v1175_v47  ;;  %v1453_v34 = vld [vmem:[%s1954_s2 + $0x50] sm:$0xff]   ;;  %v1461_v45 = vld [vmem:[%s1954_s2 + $0xa0] sm:$0xff]   ;;  %v1462_v46 = vld [vmem:[%s1954_s2 + $0x68] sm:$0xff]  }
 0x102   :  { %1209 = vmatprep.subr.bf16.mxu1 %v1453_v34  ;;  %v1463_v47 = vld [vmem:[%s1954_s2 + $0x28] sm:$0xff]  }
 0x103   :  { %v434_v56 = vadd.f32 %v433_v51, %v1779_v52  ;;  %v444_v57 = vmul.f32 %v1779_v52, %v1779_v52  ;;  %v1784_v58 = vadd.f32 %v1279_v40, %v1177_v53  ;;  %1210 = vmatpush3.bf16.msra.mxu1 %v1454_v35  ;;  %v1457_v40 = vld [vmem:[%s1954_s2 + $0x18] sm:$0xff]   ;;  %v1464_v49 = vld [vmem:[%s1954_s2 + $0xa8] sm:$0xff]   ;;  %v1466_v51 = vld [vmem:[%s1954_s2 + $0x30] sm:$0xff]  }
 0x104   :  { %1211 = vmatprep.subr.bf16.mxu1 %v1456_v38  ;;  %v1467_v53 = vld [vmem:[%s1954_s2 + $0xb0] sm:$0xff]  }
 0x105   :  { %v447_v60 = vadd.f32 %v446_v55, %v444_v57  ;;  %v435_v61 = vadd.f32 %v434_v56, %v1784_v58  ;;  %v445_v62 = vmul.f32 %v1784_v58, %v1784_v58  ;;  %v1468_v55 = vld [vmem:[%s1954_s2 + $0x78] sm:$0xff]  }
 0x106   :  { %v1469_v56 = vld [vmem:[%s1954_s2 + $0x38] sm:$0xff]  }
 0x107   :  { %v436_v0 = vrot.slane %v435_v61, 4  ;;  %v448_v1 = vadd.f32 %v447_v60, %v445_v62  ;;  %1212 = vmatpush3.bf16.msra.mxu1 %v1457_v40  ;;  %v1470_v57 = vld [vmem:[%s1954_s2 + $0xb8] sm:$0xff]  }
 0x108   :  { %1213 = vmatprep.subr.bf16.mxu1 %v1459_v43 }
 0x109   :  { %v437_v4 = vadd.f32 %v436_v0, %v435_v61  ;;  %v449_v5 = vrot.slane %v448_v1, 4 }
 0x10b   :  { %v438_v7 = vrot.slane %v437_v4, 2  ;;  %v450_v8 = vadd.f32 %v449_v5, %v448_v1  ;;  %1214 = vmatpush3.bf16.msra.mxu1 %v1460_v44 }
 0x10c   :  { %1215 = vmatprep.subr.bf16.mxu1 %v1462_v46 }
 0x10d   :  { %v439_v10 = vadd.f32 %v438_v7, %v437_v4  ;;  %v451_v11 = vrot.slane %v450_v8, 2 }
 0x10f   :  { %v440_v14 = vrot.slane %v439_v10, 1  ;;  %v452_v15 = vadd.f32 %v451_v11, %v450_v8  ;;  %1216 = vmatpush3.bf16.msra.mxu1 %v1463_v47  ;;  %v1479_v8 = vmov 1966171168  }
 0x110   :  { %1217 = vmatprep.subr.bf16.mxu1 %v1465_v50 }
 0x111   :  { %v453_v17 = vrot.slane %v452_v15, 1  ;;  %v441_v18 = vadd.f32 %v440_v14, %v439_v10  ;;  %v555_v10 = vunpack.c.l.s4 %v1479_v8 }
 0x113   :  { %v454_v20 = vadd.f32 %v453_v17, %v452_v15  ;;  %1218 = vmatpush3.bf16.msra.mxu1 %v1466_v51  ;;  %v556_v11 = vunpack.c.0.s8 %v555_v10 }
 0x114   :  { %1219 = vmatprep.subr.bf16.mxu1 %v1468_v55 }
 0x115   :  { %v456_v21 = vsel %vm455_vm12, %v441_v18, %v454_v20  ;;  %v1864_v14 = vsub.s32 %v556_v11, %v1561_v13  ;;  %v550_v20 = vld [vmem:[%s1955_s4] sm:$0x1] }
 0x116   :  { %1313 = vmatmul.mubr.f32.vlgmr.msra.gmra.mrb[8].mxu0 %v456_v21 }
 0x117   :  { %1316 = vmatpush3.bf16.msra.mxu0 %v1449_v27  ;;  %1220 = vmatpush3.bf16.msra.mxu1 %v1469_v56  ;;  %v571_v27 = vld [vmem:[%s1956_s5] sm:$0x1] }
 0x118   :  { %1317 = vmatprep.subr.bf16.mxu0 %v1452_v33  ;;  %1394 = vmatprep.subr.bf16.mxu1 %v1476_v3 }
 0x11b   :  { %1318 = vmatpush3.bf16.msra.mxu0 %v1452_v33 }
 0x11c   :  { %1319 = vmatprep.subr.bf16.mxu0 %v1455_v36 }
 0x11f   :  { %1320 = vmatpush3.bf16.msra.mxu0 %v1455_v36 }
 0x120   :  { %1321 = vmatprep.subr.bf16.mxu0 %v1458_v41 }
 0x123   :  { %1322 = vmatpush3.bf16.msra.mxu0 %v1458_v41 }
 0x124   :  { %1323 = vmatprep.subr.bf16.mxu0 %v1461_v45 }
 0x127   :  { %1324 = vmatpush3.bf16.msra.mxu0 %v1461_v45 }
 0x128   :  { %1325 = vmatprep.subr.bf16.mxu0 %v1464_v49 }
 0x12b   :  { %1326 = vmatpush3.bf16.msra.mxu0 %v1464_v49 }
 0x12c   :  { %1327 = vmatprep.subr.bf16.mxu0 %v1467_v53 }
 0x12f   :  { %1328 = vmatpush3.bf16.msra.mxu0 %v1467_v53 }
 0x130   :  { %1329 = vmatprep.subr.bf16.mxu0 %v1470_v57 }
 0x133   :  { %1330 = vmatpush3.bf16.msra.mxu0 %v1470_v57 }
 0x1e9   :  { %v539_v60 = vpop.f32.mrb[8].mxu0 }
 0x1ea   :  { %v543_v61 = vmul.f32 0.03125, %v539_v60  ;;  %v1314_v62 = vpop.f32.mrb[9].mxu0 }
 0x1ec   :  { %v544_v0 = vmul.f32 %v543_v61, %v543_v61 }
 0x1ee   :  { %v546_v1 = vrot.slane %v544_v0, 7 }
 0x1f0   :  { %v548_v4 = vsub.f32 %v543_v61, %v546_v1 }
 0x1f2   :  { %v549_v5 = vmax.f32 %v548_v4, 0.0 }
 0x1f4   :  { %v551_v7 = vadd.f32 1e-05, %v549_v5 }
 0x1f6   :  { %1471 = vrsqrt.f32 %v551_v7 }
 0x200   :  { %v1472_v15 = vpop.eup %1471 }
 0x201   :  { %v560_v17 = vrot.slane %v1472_v15, %v1864_v14 }
 0x203   :  { %v561_v18 = vcombine.high %v560_v17, %v560_v17 }
 0x205   :  { %v568_v21 = vrot.slane %v561_v18, %v1864_v14 }
 0x207   :  { %v570_v24 = vmul.f32 %v568_v21, %v550_v20 }
 0x209   :  { %v572_v31 = vmul.f32 %v570_v24, %v543_v61  ;;  %v578_v32 = vrot.slane %v570_v24, %v1872_v23 }
 0x20b   :  { %v573_v33 = vsub.f32 %v571_v27, %v572_v31  ;;  %v582_v34 = vmul.f32 %v578_v32, %v1779_v52  ;;  %v583_v35 = vmul.f32 %v578_v32, %v1784_v58  ;;  %v580_v38 = vmul.f32 %v578_v32, %v1769_v39 }
 0x20c   :  { %v581_v40 = vmul.f32 %v578_v32, %v1771_v42 }
 0x20d   :  { %v588_v36 = vrot.slane %v573_v33, %v1872_v23 }
 0x20f   :  { %v592_v41 = vadd.f32 %v588_v36, %v582_v34  ;;  %v593_v43 = vadd.f32 %v588_v36, %v583_v35  ;;  %v590_v44 = vadd.f32 %v588_v36, %v580_v38  ;;  %v591_v45 = vadd.f32 %v588_v36, %v581_v40 }
 0x211   :  { %v597_v46 = vmax.f32 %v593_v43, 0.0  ;;  %v594_v47 = vmax.f32 %v590_v44, 0.0  ;;  %v595_v49 = vmax.f32 %v591_v45, 0.0  ;;  %v596_v50 = vmax.f32 %v592_v41, 0.0 }
 0x213   :  { %v598_v51 = vrot.slane %v594_v47, 7  ;;  %v599_v53 = vrot.slane %v595_v49, 7  ;;  %v623_v55 = vpack.c.bf16 %v595_v49, %v594_v47  ;;  %v601_v52 = vrot.slane %v597_v46, 7 }
 0x214   :  { %v610_v56 = vrot.slane %v594_v47, 1  ;;  %v611_v58 = vrot.slane %v595_v49, 1  ;;  %v612_v57 = vrot.slane %v596_v50, 1  ;;  %v613_v60 = vrot.slane %v597_v46, 1 }
 0x215   :  { %852 = vmatprep.mubr.bf16.mxu1 %v623_v55  ;;  %v604_v39 = vsel %vm99_vm0, %v598_v51, %v599_v53  ;;  %v605_v42 = vsel %vm99_vm0, %v601_v52, %v598_v51  ;;  %v626_v1 = vpack.c.bf16 %v597_v46, %v596_v50  ;;  %v600_v8 = vrot.slane %v596_v50, 7 }
 0x216   :  { %v1139_v61 = vpack.c.bf16 %v604_v39, %v605_v42  ;;  %v615_v62 = vsel %vm120_vm2, %v611_v58, %v612_v57  ;;  %v616_v0 = vsel %vm120_vm2, %v610_v56, %v611_v58  ;;  %v614_v5 = vsel %vm120_vm2, %v612_v57, %v613_v60 }
 0x217   :  { %v1145_v4 = vpack.c.bf16 %v615_v62, %v616_v0  ;;  %v617_v7 = vsel %vm120_vm2, %v613_v60, %v610_v56  ;;  %v602_v11 = vsel %vm99_vm0, %v600_v8, %v601_v52  ;;  %v603_v15 = vsel %vm99_vm0, %v599_v53, %v600_v8 }
 0x218   :  { %1140 = vmatmul.mubr.msk.bf16.vlgmr.msra.gmra.mrb[4].mxu1 %vm1658_vm7, %v1139_v61  ;;  %v1148_v10 = vpack.c.bf16 %v617_v7, %v614_v5  ;;  %v1142_v54 = vpack.c.bf16 %v602_v11, %v603_v15 }
 0x219   :  { %1331 = vmatprep.mubr.msk.bf16.mxu0 %vm1648_vm5, %v1145_v4  ;;  %860 = vmatprep.mubr.bf16.mxu1 %v626_v1 }
 0x21a   :  { %1332 = vmatmul.mubr.msk.bf16.vlgmr.msra.gmra.mrb[12].mxu0 %vm1668_vm8, %v1148_v10  ;;  %1396 = vmatpush3.bf16.msra.mxu1 %v1693_v2  ;;  %v1018_v10 = vld [vmem:[%s1957_s6] sm:$0x1] }
 0x21b   :  { %1397 = vmatprep.subr.bf16.mxu1 %v1476_v3 }
 0x21e   :  { %1399 = vmatpush3.bf16.msra.mxu1 %v1704_v6 }
 0x21f   :  { %1400 = vmatprep.subr.bf16.mxu1 %v1476_v3 }
 0x220   :  { %1143 = vmatmul.mubr.msk.bf16.gmra.mrb[8].mxu1 %vm1681_vm10, %v1142_v54  ;;  %v1039_v54 = vld [vmem:[%s1958_s7] sm:$0x1] }
 0x221   :  { %1367 = vmatprep.mubr.msk.f32.mxu1 %vm1477_vm11, %v1478_v25 }
 0x222   :  { %1402 = vmatpush3.bf16.msra.mxu1 %v1714_v9 }
 0x223   :  { %1403 = vmatprep.subr.bf16.mxu1 %v1476_v3 }
 0x226   :  { %1405 = vmatpush3.bf16.msra.mxu1 %v1724_v12 }
 0x227   :  { %1406 = vmatprep.subr.bf16.mxu1 %v1476_v3 }
 0x22a   :  { %1408 = vmatpush3.bf16.msra.mxu1 %v1734_v16 }
 0x22b   :  { %1409 = vmatprep.subr.bf16.mxu1 %v1476_v3 }
 0x22e   :  { %1411 = vmatpush3.bf16.msra.mxu1 %v1744_v19 }
 0x22f   :  { %1412 = vmatprep.subr.bf16.mxu1 %v1476_v3 }
 0x232   :  { %1414 = vmatpush3.bf16.msra.mxu1 %v1754_v22 }
 0x233   :  { %1415 = vmatprep.subr.bf16.mxu1 %v1476_v3 }
 0x236   :  { %1417 = vmatpush3.bf16.msra.mxu1 %v1765_v26 }
 0x2eb   :  { %v1221_v13 = vpop.f32.mrb[4].mxu1 }
 0x2ec   :  { %v1222_v48 = vpop.f32.mrb[5].mxu1 }
 0x2ed   :  { %v1223_v59 = vadd.f32 %v1222_v48, %v1221_v13  ;;  %v1333_v63 = vpop.f32.mrb[12].mxu0  ;;  %v1224_v2 = vpop.f32.mrb[6].mxu1 }
 0x2ee   :  { %v903_v6 = vpop.f32.mrb[13].mxu0  ;;  %v1225_v9 = vpop.f32.mrb[7].mxu1 }
 0x2ef   :  { %v904_v12 = vadd.f32 %v1223_v59, %v903_v6  ;;  %v1226_v16 = vadd.f32 %v1225_v9, %v1224_v2  ;;  %v1334_v25 = vpop.f32.mrb[14].mxu0 }
 0x2f0   :  { %v906_v17 = vpop.f32.mrb[15].mxu0 }
 0x2f1   :  { %v907_v19 = vadd.f32 %v1226_v16, %v906_v17  ;;  %v927_v27 = vmul.f32 %v904_v12, %v904_v12 }
 0x2f3   :  { %v1227_v18 = vpop.f32.mrb[8].mxu1  ;;  %v928_v21 = vmul.f32 %v907_v19, %v907_v19  ;;  %v918_v26 = vadd.f32 %v907_v19, %v904_v12 }
 0x2f4   :  { %v1228_v20 = vpop.f32.mrb[9].mxu1 }
 0x2f5   :  { %v1229_v22 = vadd.f32 %v1228_v20, %v1227_v18  ;;  %v1230_v24 = vpop.f32.mrb[10].mxu1  ;;  %v931_v33 = vadd.f32 %v928_v21, %v927_v27 }
 0x2f6   :  { %v1231_v3 = vpop.f32.mrb[11].mxu1 }
 0x2f7   :  { %v912_v31 = vadd.f32 %v1333_v63, %v1229_v22  ;;  %v1232_v32 = vadd.f32 %v1231_v3, %v1230_v24 }
 0x2f9   :  { %v919_v34 = vadd.f32 %v918_v26, %v912_v31  ;;  %v929_v35 = vmul.f32 %v912_v31, %v912_v31  ;;  %v915_v36 = vadd.f32 %v1334_v25, %v1232_v32 }
 0x2fb   :  { %v932_v38 = vadd.f32 %v931_v33, %v929_v35  ;;  %v920_v40 = vadd.f32 %v919_v34, %v915_v36  ;;  %v930_v41 = vmul.f32 %v915_v36, %v915_v36 }
 0x2fd   :  { %v921_v43 = vrot.slane %v920_v40, 4  ;;  %v933_v44 = vadd.f32 %v932_v38, %v930_v41 }
 0x2ff   :  { %v922_v45 = vadd.f32 %v921_v43, %v920_v40  ;;  %v934_v46 = vrot.slane %v933_v44, 4 }
 0x301   :  { %v923_v47 = vrot.slane %v922_v45, 2  ;;  %v935_v49 = vadd.f32 %v934_v46, %v933_v44 }
 0x303   :  { %v924_v50 = vadd.f32 %v923_v47, %v922_v45  ;;  %v936_v51 = vrot.slane %v935_v49, 2 }
 0x305   :  { %v925_v53 = vrot.slane %v924_v50, 1  ;;  %v937_v55 = vadd.f32 %v936_v51, %v935_v49 }
 0x307   :  { %v938_v52 = vrot.slane %v937_v55, 1  ;;  %v926_v56 = vadd.f32 %v925_v53, %v924_v50 }
 0x309   :  { %v939_v58 = vadd.f32 %v938_v52, %v937_v55 }
 0x30b   :  { %v940_v57 = vsel %vm455_vm12, %v926_v56, %v939_v58 }
 0x30c   :  { %1368 = vmatmul.mubr.f32.vlgmr.msra.gmra.mrb[12].mxu1 %v940_v57 }
 0x3df   :  { %v1007_v39 = vpop.f32.mrb[12].mxu1 }
 0x3e0   :  { %v1011_v42 = vmul.f32 0.03125, %v1007_v39  ;;  %v1369_v60 = vpop.f32.mrb[13].mxu1 }
 0x3e2   :  { %v1012_v61 = vmul.f32 %v1011_v42, %v1011_v42 }
 0x3e4   :  { %v1014_v62 = vrot.slane %v1012_v61, 7 }
 0x3e6   :  { %v1016_v0 = vsub.f32 %v1011_v42, %v1014_v62 }
 0x3e8   :  { %v1017_v1 = vmax.f32 %v1016_v0, 0.0 }
 0x3ea   :  { %v1019_v4 = vadd.f32 1e-05, %v1017_v1 }
 0x3ec   :  { %1473 = vrsqrt.f32 %v1019_v4 }
 0x3f6   :  { %v1474_v5 = vpop.eup %1473 }
 0x3f7   :  { %v1028_v7 = vrot.slane %v1474_v5, %v1864_v14 }
 0x3f9   :  { %v1029_v8 = vcombine.high %v1028_v7, %v1028_v7 }
 0x3fb   :  { %v1036_v11 = vrot.slane %v1029_v8, %v1864_v14 }
 0x3fd   :  { %v1038_v15 = vmul.f32 %v1036_v11, %v1018_v10 }
 0x3ff   :  { %v1040_v13 = vmul.f32 %v1038_v15, %v1011_v42  ;;  %v1046_v48 = vrot.slane %v1038_v15, %v1872_v23 }
 0x401   :  { %v1041_v59 = vsub.f32 %v1039_v54, %v1040_v13  ;;  %v1048_v63 = vmul.f32 %v1046_v48, %v904_v12  ;;  %v1049_v2 = vmul.f32 %v1046_v48, %v907_v19  ;;  %v1050_v6 = vmul.f32 %v1046_v48, %v912_v31 }
 0x402   :  { %v1051_v9 = vmul.f32 %v1046_v48, %v915_v36 }
 0x403   :  { %v1056_v16 = vrot.slane %v1041_v59, %v1872_v23 }
 0x405   :  { %v1058_v25 = vadd.f32 %v1056_v16, %v1048_v63  ;;  %v1059_v17 = vadd.f32 %v1056_v16, %v1049_v2  ;;  %v1060_v18 = vadd.f32 %v1056_v16, %v1050_v6  ;;  %v1061_v20 = vadd.f32 %v1056_v16, %v1051_v9 }
 0x407   :  { %v1062_v14 = vadd.f32 %v1058_v25, %v1600_v28  ;;  %v1063_v21 = vadd.f32 %v1059_v17, %v1605_v29  ;;  %v1064_v22 = vadd.f32 %v1060_v18, %v1625_v37  ;;  %v1065_v24 = vadd.f32 %v1061_v20, %v1610_v30 }
 0x409   :  { %v1066_v3 = vmax.f32 %v1062_v14, 0.0  ;;  %v1067_v27 = vmax.f32 %v1063_v21, 0.0  ;;  %v1068_v12 = vmax.f32 %v1064_v22, 0.0  ;;  %v1069_v19 = vmax.f32 %v1065_v24, 0.0 }
 0x40b   :  { %1070 = vst [vmem:[%s1959_s8] sm:$0xff] %v1066_v3  ;;  %1071 = vst [vmem:[%s1959_s8 + $0x8] sm:$0xff] %v1067_v27 }
 0x40c   :  { %1072 = vst [vmem:[%s1959_s8 + $0x10] sm:$0xff] %v1068_v12  ;;  %1073 = vst [vmem:[%s1959_s8 + $0x18] sm:$0xff] %v1069_v19 }

</bundles_post_ra>
